<compile_context>
chip_gen: v6e
topology: v6e:2x2x1
jax: 0.10.0
libtpu: 0.0.40
codegen_flags: <defaults>
</compile_context>

<pallas_src>
import functools

import jax
import jax.numpy as jnp
from jax.experimental import pallas as pl
from jax.experimental.pallas import tpu as pltpu


def _byol_kernel(on_ref, tg_ref, out_ref, *scratch, n_views, bt):
    """One (row-tile, D-tile) grid step.

    on_ref/tg_ref: (bt*n_views, d_tile) blocks, natural row = b*n_views + v.
    out_ref:       (8, 128) lane-dense slab holding this row tile's masked sum.
    scratch:       2*n_views sum-of-squares accumulators + n_views*(n_views-1)
                   cross-dot accumulators, each (bt, 1) f32 in VMEM.
    """
    sq_on_refs = scratch[:n_views]
    sq_tg_refs = scratch[n_views:2 * n_views]
    cross_refs = scratch[2 * n_views:]

    k = pl.program_id(1)
    nk = pl.num_programs(1)

    @pl.when(k == 0)
    def _init():
        for ref in scratch:
            ref[...] = jnp.zeros_like(ref)

    # View u of batch element b lives at row b*n_views + u, i.e. a
    # stride-n_views sublane slice of the block (native strided vector load).
    on_views = [
        on_ref[pl.ds(u, bt, stride=n_views), :].astype(jnp.float32)
        for u in range(n_views)
    ]
    tg_views = [
        tg_ref[pl.ds(v, bt, stride=n_views), :].astype(jnp.float32)
        for v in range(n_views)
    ]

    # Partial sum-of-squares per row (for separable L2 normalization).
    for u in range(n_views):
        sq_on_refs[u][...] += jnp.sum(on_views[u] * on_views[u], axis=1, keepdims=True)
        sq_tg_refs[u][...] += jnp.sum(tg_views[u] * tg_views[u], axis=1, keepdims=True)

    # Partial raw dots for every ordered view pair (u, v), u != v — these are
    # the only entries of the N x N similarity matrix the mask keeps.
    p = 0
    for u in range(n_views):
        for v in range(n_views):
            if u == v:
                continue
            cross_refs[p][...] += jnp.sum(on_views[u] * tg_views[v],
                                          axis=1, keepdims=True)
            p += 1

    @pl.when(k == nk - 1)
    def _finalize():
        # 1/max(||x||, 1e-12) == rsqrt(max(||x||^2, 1e-24))  (F.normalize eps).
        eps2 = jnp.float32(1e-24)
        inv_on = [jax.lax.rsqrt(jnp.maximum(sq_on_refs[u][...], eps2))
                  for u in range(n_views)]
        inv_tg = [jax.lax.rsqrt(jnp.maximum(sq_tg_refs[v][...], eps2))
                  for v in range(n_views)]
        total = jnp.zeros((1, 1), jnp.float32)
        q = 0
        for u in range(n_views):
            for v in range(n_views):
                if u == v:
                    continue
                total = total + jnp.sum(cross_refs[q][...] * inv_on[u] * inv_tg[v],
                                        axis=0, keepdims=True)
                q += 1
        out_ref[...] = jnp.broadcast_to(total, out_ref.shape)


def byol_loss(online_features, target_features, labels=None, mask=None):
    if online_features.shape != target_features.shape:
        raise ValueError("Online and target features does not have the same shape")
    if online_features.ndim < 3:
        raise ValueError(
            "`features` needs to be [bsz, n_views, ...], at least 3 dimensions are required")
    if labels is not None and mask is not None:
        raise ValueError("Cannot define both `labels` and `mask`")
    if labels is not None or mask is not None:
        # TODO(synk): supervised-contrastive mask/labels variants are not
        # implemented in the Pallas fast path (default BYOL mask = eye only).
        raise NotImplementedError("Only the default (labels=None, mask=None) path is implemented")

    bsz, n_views = online_features.shape[0], online_features.shape[1]
    # Natural layout, row = b*n_views + v (plain reshape; no transpose copy).
    of = jnp.reshape(online_features, (bsz * n_views, -1))
    tf = jnp.reshape(target_features, (bsz * n_views, -1))
    if of.dtype not in (jnp.float32, jnp.bfloat16):
        of = of.astype(jnp.float32)
        tf = tf.astype(jnp.float32)
    rows, d = of.shape

    itemsize = of.dtype.itemsize
    min_sub = 8 * (4 // itemsize)          # sublane multiple: 8 (f32) / 16 (bf16)
    max_block_elems = 256 * 1024           # ~1 MiB f32 per input block in VMEM

    def pick_d_tile(dd, cap):
        cap = max(128, (min(dd, cap) // 128) * 128)
        t = cap
        while t >= 128:
            if dd % t == 0:
                return t
            t -= 128
        return dd

    if d % 128 == 0:
        d_tile = pick_d_tile(d, 2048)
    elif rows * d <= 4 * max_block_elems:
        d_tile = d                          # small, lane-odd D: one full-extent block, no pad
    else:
        # Rare: large, non-128-aligned D — pad so it can be tiled (zeros are inert).
        d_pad = ((d + 127) // 128) * 128
        of = jnp.pad(of, ((0, 0), (0, d_pad - d)))
        tf = jnp.pad(tf, ((0, 0), (0, d_pad - d)))
        d = d_pad
        d_tile = pick_d_tile(d, 2048)

    # Batch elements per row tile: largest divisor of bsz whose block respects
    # the sublane tiling rule and the VMEM budget (full-extent block is exempt).
    bt = bsz
    for cand in range(bsz, 0, -1):
        if bsz % cand:
            continue
        rpt = cand * n_views
        if cand != bsz and rpt % min_sub != 0:
            continue
        if rpt * d_tile <= max_block_elems:
            bt = cand
            break
    if bt == bsz and bsz * n_views * d_tile > max_block_elems and d % 128 == 0:
        # Could not tile rows (awkward bsz): shrink the feature tile instead.
        d_tile = pick_d_tile(d, max(128, (max_block_elems // (bsz * n_views)) // 128 * 128))

    rows_per_tile = bt * n_views
    g_b = bsz // bt
    g_k = d // d_tile
    n_pairs = n_views * (n_views - 1)

    kernel = functools.partial(_byol_kernel, n_views=n_views, bt=bt)
    cp_cls = getattr(pltpu, "CompilerParams", None) or getattr(pltpu, "TPUCompilerParams")

    partials = pl.pallas_call(
        kernel,
        out_shape=jax.ShapeDtypeStruct((8 * g_b, 128), jnp.float32),
        grid=(g_b, g_k),
        in_specs=[
            pl.BlockSpec((rows_per_tile, d_tile), lambda i, k: (i, k)),
            pl.BlockSpec((rows_per_tile, d_tile), lambda i, k: (i, k)),
        ],
        out_specs=pl.BlockSpec((8, 128), lambda i, k: (i, 0)),
        scratch_shapes=[pltpu.VMEM((bt, 1), jnp.float32)
                        for _ in range(2 * n_views + n_pairs)],
        compiler_params=cp_cls(dimension_semantics=("parallel", "arbitrary")),
    )(of, tf)

    masked_sum = jnp.sum(partials[0::8, 0])
    return 2.0 * n_views - 2.0 * masked_sum / bsz


def _byol_loss_ref(online_features, target_features):
    """Pure-JAX reference mirroring the PyTorch module (labels=None, mask=None)."""
    bsz, n_views = online_features.shape[0], online_features.shape[1]
    of = online_features.reshape(bsz, n_views, -1).astype(jnp.float32)
    tf = target_features.reshape(bsz, n_views, -1).astype(jnp.float32)
    n = n_views * bsz
    of = jnp.transpose(of, (1, 0, 2)).reshape(n, -1)
    tf = jnp.transpose(tf, (1, 0, 2)).reshape(n, -1)
    of = of / jnp.maximum(jnp.linalg.norm(of, axis=1, keepdims=True), 1e-12)
    tf = tf / jnp.maximum(jnp.linalg.norm(tf, axis=1, keepdims=True), 1e-12)
    dm = of @ tf.T
    mask = jnp.tile(jnp.eye(bsz, dtype=jnp.float32), (n_views, n_views))
    mask = mask * (1.0 - jnp.eye(n, dtype=jnp.float32))
    return 2.0 * n_views - 2.0 * jnp.sum(dm * mask) / bsz


if __name__ == "__main__":
    key = jax.random.PRNGKey(0)
    k1, k2, k3, k4 = jax.random.split(key, 4)

    # Small primary check (single block, odd lane width, no padding).
    bsz, n_views, feat = 4, 2, 32
    online = jax.random.normal(k1, (bsz, n_views, feat), dtype=jnp.float32)
    target = jax.random.normal(k2, (bsz, n_views, feat), dtype=jnp.float32)
    loss = jax.block_until_ready(byol_loss(online, target))
    ref = jax.block_until_ready(_byol_loss_ref(online, target))
    assert jnp.allclose(loss, ref, rtol=1e-5, atol=1e-5), (loss, ref)

    # Larger check exercising the tiled path: 2 row tiles x 2 feature tiles,
    # trailing spatial dims flattened inside the wrapper.
    online2 = jax.random.normal(k3, (128, 2, 64, 64), dtype=jnp.float32)
    target2 = jax.random.normal(k4, (128, 2, 64, 64), dtype=jnp.float32)
    loss2 = jax.block_until_ready(byol_loss(online2, target2))
    ref2 = jax.block_until_ready(_byol_loss_ref(online2, target2))
    assert jnp.allclose(loss2, ref2, rtol=1e-5, atol=1e-4), (loss2, ref2)

    print("KERNEL_OK")
</pallas_src>

<mosaic_0001>
module attributes {stable_mosaic.version = 11 : i64} {
  func.func @_byol_kernel(%arg0: i32, %arg1: i32, %arg2: memref<8x32xf32, #tpu.memory_space<vmem>>, %arg3: memref<8x32xf32, #tpu.memory_space<vmem>>, %arg4: memref<8x128xf32, #tpu.memory_space<vmem>>, %arg5: memref<4x1xf32, #tpu.memory_space<vmem>>, %arg6: memref<4x1xf32, #tpu.memory_space<vmem>>, %arg7: memref<4x1xf32, #tpu.memory_space<vmem>>, %arg8: memref<4x1xf32, #tpu.memory_space<vmem>>, %arg9: memref<4x1xf32, #tpu.memory_space<vmem>>, %arg10: memref<4x1xf32, #tpu.memory_space<vmem>>) attributes {dimension_semantics = [#tpu.dimension_semantics<parallel>, #tpu.dimension_semantics<arbitrary>], iteration_bounds = array<i64: 1, 1>, scalar_prefetch = 0 : i64, scratch_operands = 6 : i64, tpu.core_type = #tpu.core_type<tc>, window_params = [{transform_indices = @transform_0, window_bounds = array<i64: 8, 32>}, {transform_indices = @transform_1, window_bounds = array<i64: 8, 32>}, {transform_indices = @transform_2, window_bounds = array<i64: 8, 128>}]} {
    %c0_i32 = arith.constant 0 : i32
    %0 = arith.cmpi eq, %arg1, %c0_i32 : i32
    %1 = arith.extui %0 : i1 to i32
    %c0_i32_0 = arith.constant 0 : i32
    %2 = arith.cmpi ne, %1, %c0_i32_0 : i32
    scf.if %2 {
      %cst_38 = arith.constant 0.000000e+00 : f32
      %46 = vector.broadcast %cst_38 : f32 to vector<4x1xf32>
      %c0_39 = arith.constant 0 : index
      %c0_40 = arith.constant 0 : index
      %47 = vector.load %arg5[%c0_39, %c0_40] : memref<4x1xf32, #tpu.memory_space<vmem>>, vector<4x1xf32>
      tpu.vector_store %arg5[%c0_39, %c0_40], %46 {strides = array<i32>} : memref<4x1xf32, #tpu.memory_space<vmem>>, vector<4x1xf32>,
      %cst_41 = arith.constant 0.000000e+00 : f32
      %48 = vector.broadcast %cst_41 : f32 to vector<4x1xf32>
      %c0_42 = arith.constant 0 : index
      %c0_43 = arith.constant 0 : index
      %49 = vector.load %arg6[%c0_42, %c0_43] : memref<4x1xf32, #tpu.memory_space<vmem>>, vector<4x1xf32>
      tpu.vector_store %arg6[%c0_42, %c0_43], %48 {strides = array<i32>} : memref<4x1xf32, #tpu.memory_space<vmem>>, vector<4x1xf32>,
      %cst_44 = arith.constant 0.000000e+00 : f32
      %50 = vector.broadcast %cst_44 : f32 to vector<4x1xf32>
      %c0_45 = arith.constant 0 : index
      %c0_46 = arith.constant 0 : index
      %51 = vector.load %arg7[%c0_45, %c0_46] : memref<4x1xf32, #tpu.memory_space<vmem>>, vector<4x1xf32>
      tpu.vector_store %arg7[%c0_45, %c0_46], %50 {strides = array<i32>} : memref<4x1xf32, #tpu.memory_space<vmem>>, vector<4x1xf32>,
      %cst_47 = arith.constant 0.000000e+00 : f32
      %52 = vector.broadcast %cst_47 : f32 to vector<4x1xf32>
      %c0_48 = arith.constant 0 : index
      %c0_49 = arith.constant 0 : index
      %53 = vector.load %arg8[%c0_48, %c0_49] : memref<4x1xf32, #tpu.memory_space<vmem>>, vector<4x1xf32>
      tpu.vector_store %arg8[%c0_48, %c0_49], %52 {strides = array<i32>} : memref<4x1xf32, #tpu.memory_space<vmem>>, vector<4x1xf32>,
      %cst_50 = arith.constant 0.000000e+00 : f32
      %54 = vector.broadcast %cst_50 : f32 to vector<4x1xf32>
      %c0_51 = arith.constant 0 : index
      %c0_52 = arith.constant 0 : index
      %55 = vector.load %arg9[%c0_51, %c0_52] : memref<4x1xf32, #tpu.memory_space<vmem>>, vector<4x1xf32>
      tpu.vector_store %arg9[%c0_51, %c0_52], %54 {strides = array<i32>} : memref<4x1xf32, #tpu.memory_space<vmem>>, vector<4x1xf32>,
      %cst_53 = arith.constant 0.000000e+00 : f32
      %56 = vector.broadcast %cst_53 : f32 to vector<4x1xf32>
      %c0_54 = arith.constant 0 : index
      %c0_55 = arith.constant 0 : index
      %57 = vector.load %arg10[%c0_54, %c0_55] : memref<4x1xf32, #tpu.memory_space<vmem>>, vector<4x1xf32>
      tpu.vector_store %arg10[%c0_54, %c0_55], %56 {strides = array<i32>} : memref<4x1xf32, #tpu.memory_space<vmem>>, vector<4x1xf32>,
    } else {
    }
    %c0 = arith.constant 0 : index
    %c0_1 = arith.constant 0 : index
    %3 = tpu.strided_load %arg2[%c0, %c0_1] {strides = array<i32: 2, 1>} : memref<8x32xf32, #tpu.memory_space<vmem>>, vector<4x32xf32>
    %c1 = arith.constant 1 : index
    %c0_2 = arith.constant 0 : index
    %4 = tpu.strided_load %arg2[%c1, %c0_2] {strides = array<i32: 2, 1>} : memref<8x32xf32, #tpu.memory_space<vmem>>, vector<4x32xf32>
    %c0_3 = arith.constant 0 : index
    %c0_4 = arith.constant 0 : index
    %5 = tpu.strided_load %arg3[%c0_3, %c0_4] {strides = array<i32: 2, 1>} : memref<8x32xf32, #tpu.memory_space<vmem>>, vector<4x32xf32>
    %c1_5 = arith.constant 1 : index
    %c0_6 = arith.constant 0 : index
    %6 = tpu.strided_load %arg3[%c1_5, %c0_6] {strides = array<i32: 2, 1>} : memref<8x32xf32, #tpu.memory_space<vmem>>, vector<4x32xf32>
    %c0_7 = arith.constant 0 : index
    %c0_8 = arith.constant 0 : index
    %7 = vector.load %arg5[%c0_7, %c0_8] : memref<4x1xf32, #tpu.memory_space<vmem>>, vector<4x1xf32>
    %8 = arith.mulf %3, %3 : vector<4x32xf32>
    %cst = arith.constant dense<0.000000e+00> : vector<4xf32>
    %9 = vector.multi_reduction <add>, %8, %cst [1] : vector<4x32xf32> to vector<4xf32>
    %10 = vector.shape_cast %9 : vector<4xf32> to vector<4x1xf32>
    %11 = arith.addf %7, %10 : vector<4x1xf32>
    %c0_9 = arith.constant 0 : index
    %c0_10 = arith.constant 0 : index
    %12 = vector.load %arg5[%c0_9, %c0_10] : memref<4x1xf32, #tpu.memory_space<vmem>>, vector<4x1xf32>
    tpu.vector_store %arg5[%c0_9, %c0_10], %11 {strides = array<i32>} : memref<4x1xf32, #tpu.memory_space<vmem>>, vector<4x1xf32>,
    %c0_11 = arith.constant 0 : index
    %c0_12 = arith.constant 0 : index
    %13 = vector.load %arg7[%c0_11, %c0_12] : memref<4x1xf32, #tpu.memory_space<vmem>>, vector<4x1xf32>
    %14 = arith.mulf %5, %5 : vector<4x32xf32>
    %cst_13 = arith.constant dense<0.000000e+00> : vector<4xf32>
    %15 = vector.multi_reduction <add>, %14, %cst_13 [1] : vector<4x32xf32> to vector<4xf32>
    %16 = vector.shape_cast %15 : vector<4xf32> to vector<4x1xf32>
    %17 = arith.addf %13, %16 : vector<4x1xf32>
    %c0_14 = arith.constant 0 : index
    %c0_15 = arith.constant 0 : index
    %18 = vector.load %arg7[%c0_14, %c0_15] : memref<4x1xf32, #tpu.memory_space<vmem>>, vector<4x1xf32>
    tpu.vector_store %arg7[%c0_14, %c0_15], %17 {strides = array<i32>} : memref<4x1xf32, #tpu.memory_space<vmem>>, vector<4x1xf32>,
    %c0_16 = arith.constant 0 : index
    %c0_17 = arith.constant 0 : index
    %19 = vector.load %arg6[%c0_16, %c0_17] : memref<4x1xf32, #tpu.memory_space<vmem>>, vector<4x1xf32>
    %20 = arith.mulf %4, %4 : vector<4x32xf32>
    %cst_18 = arith.constant dense<0.000000e+00> : vector<4xf32>
    %21 = vector.multi_reduction <add>, %20, %cst_18 [1] : vector<4x32xf32> to vector<4xf32>
    %22 = vector.shape_cast %21 : vector<4xf32> to vector<4x1xf32>
    %23 = arith.addf %19, %22 : vector<4x1xf32>
    %c0_19 = arith.constant 0 : index
    %c0_20 = arith.constant 0 : index
    %24 = vector.load %arg6[%c0_19, %c0_20] : memref<4x1xf32, #tpu.memory_space<vmem>>, vector<4x1xf32>
    tpu.vector_store %arg6[%c0_19, %c0_20], %23 {strides = array<i32>} : memref<4x1xf32, #tpu.memory_space<vmem>>, vector<4x1xf32>,
    %c0_21 = arith.constant 0 : index
    %c0_22 = arith.constant 0 : index
    %25 = vector.load %arg8[%c0_21, %c0_22] : memref<4x1xf32, #tpu.memory_space<vmem>>, vector<4x1xf32>
    %26 = arith.mulf %6, %6 : vector<4x32xf32>
    %cst_23 = arith.constant dense<0.000000e+00> : vector<4xf32>
    %27 = vector.multi_reduction <add>, %26, %cst_23 [1] : vector<4x32xf32> to vector<4xf32>
    %28 = vector.shape_cast %27 : vector<4xf32> to vector<4x1xf32>
    %29 = arith.addf %25, %28 : vector<4x1xf32>
    %c0_24 = arith.constant 0 : index
    %c0_25 = arith.constant 0 : index
    %30 = vector.load %arg8[%c0_24, %c0_25] : memref<4x1xf32, #tpu.memory_space<vmem>>, vector<4x1xf32>
    tpu.vector_store %arg8[%c0_24, %c0_25], %29 {strides = array<i32>} : memref<4x1xf32, #tpu.memory_space<vmem>>, vector<4x1xf32>,
    %c0_26 = arith.constant 0 : index
    %c0_27 = arith.constant 0 : index
    %31 = vector.load %arg9[%c0_26, %c0_27] : memref<4x1xf32, #tpu.memory_space<vmem>>, vector<4x1xf32>
    %32 = arith.mulf %3, %6 : vector<4x32xf32>
    %cst_28 = arith.constant dense<0.000000e+00> : vector<4xf32>
    %33 = vector.multi_reduction <add>, %32, %cst_28 [1] : vector<4x32xf32> to vector<4xf32>
    %34 = vector.shape_cast %33 : vector<4xf32> to vector<4x1xf32>
    %35 = arith.addf %31, %34 : vector<4x1xf32>
    %c0_29 = arith.constant 0 : index
    %c0_30 = arith.constant 0 : index
    %36 = vector.load %arg9[%c0_29, %c0_30] : memref<4x1xf32, #tpu.memory_space<vmem>>, vector<4x1xf32>
    tpu.vector_store %arg9[%c0_29, %c0_30], %35 {strides = array<i32>} : memref<4x1xf32, #tpu.memory_space<vmem>>, vector<4x1xf32>,
    %c0_31 = arith.constant 0 : index
    %c0_32 = arith.constant 0 : index
    %37 = vector.load %arg10[%c0_31, %c0_32] : memref<4x1xf32, #tpu.memory_space<vmem>>, vector<4x1xf32>
    %38 = arith.mulf %4, %5 : vector<4x32xf32>
    %cst_33 = arith.constant dense<0.000000e+00> : vector<4xf32>
    %39 = vector.multi_reduction <add>, %38, %cst_33 [1] : vector<4x32xf32> to vector<4xf32>
    %40 = vector.shape_cast %39 : vector<4xf32> to vector<4x1xf32>
    %41 = arith.addf %37, %40 : vector<4x1xf32>
    %c0_34 = arith.constant 0 : index
    %c0_35 = arith.constant 0 : index
    %42 = vector.load %arg10[%c0_34, %c0_35] : memref<4x1xf32, #tpu.memory_space<vmem>>, vector<4x1xf32>
    tpu.vector_store %arg10[%c0_34, %c0_35], %41 {strides = array<i32>} : memref<4x1xf32, #tpu.memory_space<vmem>>, vector<4x1xf32>,
    %c0_i32_36 = arith.constant 0 : i32
    %43 = arith.cmpi eq, %arg1, %c0_i32_36 : i32
    %44 = arith.extui %43 : i1 to i32
    %c0_i32_37 = arith.constant 0 : i32
    %45 = arith.cmpi ne, %44, %c0_i32_37 : i32
    scf.if %45 {
      %c0_38 = arith.constant 0 : index
      %c0_39 = arith.constant 0 : index
      %46 = vector.load %arg5[%c0_38, %c0_39] : memref<4x1xf32, #tpu.memory_space<vmem>>, vector<4x1xf32>
      %cst_40 = arith.constant 1.000000e-24 : f32
      %47 = vector.broadcast %cst_40 : f32 to vector<4x1xf32>
      %48 = arith.maximumf %46, %47 : vector<4x1xf32>
      %49 = math.rsqrt %48 : vector<4x1xf32>
      %c0_41 = arith.constant 0 : index
      %c0_42 = arith.constant 0 : index
      %50 = vector.load %arg6[%c0_41, %c0_42] : memref<4x1xf32, #tpu.memory_space<vmem>>, vector<4x1xf32>
      %cst_43 = arith.constant 1.000000e-24 : f32
      %51 = vector.broadcast %cst_43 : f32 to vector<4x1xf32>
      %52 = arith.maximumf %50, %51 : vector<4x1xf32>
      %53 = math.rsqrt %52 : vector<4x1xf32>
      %c0_44 = arith.constant 0 : index
      %c0_45 = arith.constant 0 : index
      %54 = vector.load %arg7[%c0_44, %c0_45] : memref<4x1xf32, #tpu.memory_space<vmem>>, vector<4x1xf32>
      %cst_46 = arith.constant 1.000000e-24 : f32
      %55 = vector.broadcast %cst_46 : f32 to vector<4x1xf32>
      %56 = arith.maximumf %54, %55 : vector<4x1xf32>
      %57 = math.rsqrt %56 : vector<4x1xf32>
      %c0_47 = arith.constant 0 : index
      %c0_48 = arith.constant 0 : index
      %58 = vector.load %arg8[%c0_47, %c0_48] : memref<4x1xf32, #tpu.memory_space<vmem>>, vector<4x1xf32>
      %cst_49 = arith.constant 1.000000e-24 : f32
      %59 = vector.broadcast %cst_49 : f32 to vector<4x1xf32>
      %60 = arith.maximumf %58, %59 : vector<4x1xf32>
      %61 = math.rsqrt %60 : vector<4x1xf32>
      %cst_50 = arith.constant 0.000000e+00 : f32
      %62 = vector.broadcast %cst_50 : f32 to vector<1x1xf32>
      %c0_51 = arith.constant 0 : index
      %c0_52 = arith.constant 0 : index
      %63 = vector.load %arg9[%c0_51, %c0_52] : memref<4x1xf32, #tpu.memory_space<vmem>>, vector<4x1xf32>
      %64 = arith.mulf %63, %49 : vector<4x1xf32>
      %65 = arith.mulf %64, %61 : vector<4x1xf32>
      %cst_53 = arith.constant dense<0.000000e+00> : vector<1xf32>
      %66 = vector.multi_reduction <add>, %65, %cst_53 [0] : vector<4x1xf32> to vector<1xf32>
      %67 = vector.shape_cast %66 : vector<1xf32> to vector<1x1xf32>
      %68 = arith.addf %62, %67 : vector<1x1xf32>
      %c0_54 = arith.constant 0 : index
      %c0_55 = arith.constant 0 : index
      %69 = vector.load %arg10[%c0_54, %c0_55] : memref<4x1xf32, #tpu.memory_space<vmem>>, vector<4x1xf32>
      %70 = arith.mulf %69, %53 : vector<4x1xf32>
      %71 = arith.mulf %70, %57 : vector<4x1xf32>
      %cst_56 = arith.constant dense<0.000000e+00> : vector<1xf32>
      %72 = vector.multi_reduction <add>, %71, %cst_56 [0] : vector<4x1xf32> to vector<1xf32>
      %73 = vector.shape_cast %72 : vector<1xf32> to vector<1x1xf32>
      %74 = arith.addf %68, %73 : vector<1x1xf32>
      %75 = vector.shape_cast %74 : vector<1x1xf32> to vector<1x1xf32>
      %76 = vector.broadcast %75 : vector<1x1xf32> to vector<8x128xf32>
      %c0_57 = arith.constant 0 : index
      %c0_58 = arith.constant 0 : index
      %77 = vector.load %arg4[%c0_57, %c0_58] : memref<8x128xf32, #tpu.memory_space<vmem>>, vector<8x128xf32>
      tpu.vector_store %arg4[%c0_57, %c0_58], %76 {strides = array<i32>} : memref<8x128xf32, #tpu.memory_space<vmem>>, vector<8x128xf32>,
    } else {
    }
    return
  }
  func.func @transform_0(%arg0: i32, %arg1: i32) -> (i32, i32) {
    %c0_i32 = arith.constant 0 : i32
    return %arg0, %arg1 : i32, i32
  }
  func.func @transform_1(%arg0: i32, %arg1: i32) -> (i32, i32) {
    %c0_i32 = arith.constant 0 : i32
    return %arg0, %arg1 : i32, i32
  }
  func.func @transform_2(%arg0: i32, %arg1: i32) -> (i32, i32) {
    %c0_i32 = arith.constant 0 : i32
    %c0_i32_0 = arith.constant 0 : i32
    return %arg0, %c0_i32 : i32, i32
  }
}

</mosaic_0001>

<bundles_post_ra>
// kernel: tpu_custom_call.1
= control target key start
LH: loop header
LB: loop body
LE: loop exit
PB: predicated region body
PF: predicated region fallthrough
CT: control target
= control target key end

     0   :  { %7 = vsyncpa [#allocation9], 0  ;;  %s285_s0 = inlined_call_operand.hbm [shape: f32[8,32], index: 0, kind: input, shape index: {}]   ;;  %s286_s1 = inlined_call_operand.hbm [shape: f32[8,32], index: 1, kind: input, shape index: {}]   ;;  %s287_s2 = inlined_call_operand.hbm [shape: f32[8,128], index: 2, kind: output, shape index: {}]  }
   0x1   :  { %8 = vsyncpa [#allocation12], 0 }
   0x2   :  { %9 = vsyncpa [#allocation10], 0  ;;  %s236_s9 = smov [#allocation8]   ;;  %s237_s11 = smov [#allocation11]  }
   0x3   :  { %s16_s10 = sshll.u32 %s236_s9, 4  ;;  %s26_s12 = sshll.u32 %s237_s11, 4  ;;  %s17_s10 = int_to_ptr.vmem [resolvable:$true] %s16_s10  ;;  %s27_s12 = int_to_ptr.vmem [resolvable:$true] %s26_s12 }
   0x4   :  { %s178_s13 = scalar_lea.vmem %s17_s10, 128  ;;  %p183_p1 = scmp.lt.s32.totalorder %s17_s10, %s17_s10 }
   0x5   :  { %p179_p0 = scmp.ne.s32.totalorder %s17_s10, %s178_s13  ;;  %p184_p2 = scmp.lt.s32.totalorder %s178_s13, %s178_s13 }
   0x7   :  { %p185_p3 = por %p184_p2, %p183_p1 }
   0x9   :  { %p186_p4 = pnand %p185_p3, %p179_p0 }
   0xb   :  { %189 = shalt.err (!%p186_p4)
}
   0xc   :  { %19 = dma.hbm_to_vmem [thread:$0]  %s285_s0, 128, %s17_s10, [#allocation9]  }
   0xd   :  { %s198_s16 = scalar_lea.vmem %s27_s12, 128  ;;  %p203_p6 = scmp.lt.s32.totalorder %s27_s12, %s27_s12 }
   0xe   :  { %p199_p5 = scmp.ne.s32.totalorder %s27_s12, %s198_s16  ;;  %p204_p7 = scmp.lt.s32.totalorder %s198_s16, %s198_s16 }
  0x10   :  { %p205_p8 = por %p204_p7, %p203_p6 }
  0x12   :  { %p206_p9 = pnand %p205_p8, %p199_p5 }
  0x14   :  { %209 = shalt.err (!%p206_p9)
}
  0x15   :  { %29 = dma.hbm_to_vmem [thread:$0]  %s286_s1, 128, %s27_s12, [#allocation12]  }
  0x16   :  { %230 = dma.done.wait [#allocation9], 128  }
  0x17   :  { %231 = vsyncadd [#allocation9], 4294967168 }
  0x18   :  { %232 = dma.done.wait [#allocation12], 128  }
  0x19   :  { %233 = vsyncadd [#allocation12], 4294967168  ;;  %vm40_vm0 = vcmask 3072   ;;  %v238_v0 = vmov 0.0   ;;  %vm55_vm1 = vcmask 257024   ;;  %v239_v17 = vmov 0  }
  0x1a   :  { %43 = vst.msk [vmem:[#allocation4] sm:$0xf] %vm40_vm0, %v238_v0  ;;  %41 = vst.msk [vmem:[#allocation2] sm:$0xf] %vm40_vm0, %v238_v0  ;;  %161 = vset.pattern.permute.xlu0 %v239_v17  ;;  %s240_s0 = smov [#allocation13]  }
  0x1b   :  { %42 = vst.msk [vmem:[#allocation3] sm:$0xf] %vm40_vm0, %v238_v0  ;;  %44 = vst.msk [vmem:[#allocation5] sm:$0xf] %vm40_vm0, %v238_v0  ;;  %s146_s1 = sshll.u32 %s240_s0, 4  ;;  %s147_s1 = int_to_ptr.vmem [resolvable:$true] %s146_s1 }
  0x1c   :  { %45 = vst.msk [vmem:[#allocation6] sm:$0xf] %vm40_vm0, %v238_v0  ;;  %46 = vst.msk [vmem:[#allocation7] sm:$0xf] %vm40_vm0, %v238_v0  ;;  %s210_s19 = scalar_lea.vmem %s147_s1, 128  ;;  %p215_p11 = scmp.lt.s32.totalorder %s147_s1, %s147_s1 }
  0x1d   :  { %v50_v1 = vld [vmem:[#allocation11] ss:$2 sm:$0xf]  ;;  %v47_v2 = vld [vmem:[#allocation8] ss:$2 sm:$0xf]  ;;  %p211_p10 = scmp.ne.s32.totalorder %s147_s1, %s210_s19  ;;  %p216_p12 = scmp.lt.s32.totalorder %s210_s19, %s210_s19 }
  0x1e   :  { %v63_v3 = vmul.f32 %v50_v1, %v50_v1  ;;  %v54_v4 = vmul.f32 %v47_v2, %v47_v2  ;;  %v52_v5 = vld [vmem:[#allocation11 + $0x1] ss:$2 sm:$0xf]  ;;  %v49_v6 = vld [vmem:[#allocation8 + $0x1] ss:$2 sm:$0xf] }
  0x1f   :  { %v77_v7 = vmul.f32 %v52_v5, %v52_v5  ;;  %v70_v8 = vmul.f32 %v49_v6, %v49_v6  ;;  %v84_v13 = vmul.f32 %v52_v5, %v47_v2  ;;  %v91_v14 = vmul.f32 %v50_v1, %v49_v6  ;;  %p217_p13 = por %p216_p12, %p215_p11 }
  0x20   :  { %v64_v9 = vsel %vm55_vm1, %v63_v3, 0.0  ;;  %v56_v10 = vsel %vm55_vm1, %v54_v4, 0.0 }
  0x21   :  { %65 = vadd.xlane.f32.xlu1 %v64_v9  ;;  %57 = vadd.xlane.f32.xlu0 %v56_v10  ;;  %v78_v11 = vsel %vm55_vm1, %v77_v7, 0.0  ;;  %v71_v12 = vsel %vm55_vm1, %v70_v8, 0.0  ;;  %v85_v15 = vsel %vm55_vm1, %v84_v13, 0.0  ;;  %v92_v16 = vsel %vm55_vm1, %v91_v14, 0.0  ;;  %v62_v18 = vld [vmem:[#allocation4] sm:$0xf]  ;;  %p218_p0 = pnand %p217_p13, %p211_p10 }
  0x22   :  { %v53_v19 = vld [vmem:[#allocation2] sm:$0xf]  ;;  %v76_v24 = vld [vmem:[#allocation5] sm:$0xf]  ;;  %v69_v25 = vld [vmem:[#allocation3] sm:$0xf] }
  0x23   :  { %v83_v30 = vld [vmem:[#allocation6] sm:$0xf]  ;;  %v90_v31 = vld [vmem:[#allocation7] sm:$0xf] }
  0x25   :  { %79 = vadd.xlane.f32.xlu1 %v78_v11  ;;  %72 = vadd.xlane.f32.xlu0 %v71_v12 }
  0x29   :  { %86 = vadd.xlane.f32.xlu0 %v85_v15  ;;  %93 = vadd.xlane.f32.xlu1 %v92_v16 }
  0xaa   :  { %v66_v20 = vpop.xlane.xlu1 %65  ;;  %v58_v21 = vpop.xlane.xlu0 %57 }
  0xab   :  { %v67_v22 = vadd.f32 %v66_v20, %v62_v18  ;;  %v59_v23 = vadd.f32 %v58_v21, %v53_v19 }
  0xad   :  { %68 = vst.msk [vmem:[#allocation4] sm:$0xf] %vm40_vm0, %v67_v22  ;;  %61 = vst.msk [vmem:[#allocation2] sm:$0xf] %vm40_vm0, %v59_v23 }
  0xae   :  { %v80_v26 = vpop.xlane.xlu1 %79  ;;  %v73_v27 = vpop.xlane.xlu0 %72 }
  0xaf   :  { %v81_v28 = vadd.f32 %v80_v26, %v76_v24  ;;  %v74_v29 = vadd.f32 %v73_v27, %v69_v25 }
  0xb1   :  { %82 = vst.msk [vmem:[#allocation5] sm:$0xf] %vm40_vm0, %v81_v28  ;;  %75 = vst.msk [vmem:[#allocation3] sm:$0xf] %vm40_vm0, %v74_v29 }
  0xb2   :  { %v87_v32 = vpop.xlane.xlu0 %86  ;;  %v94_v33 = vpop.xlane.xlu1 %93 }
  0xb3   :  { %v88_v34 = vadd.f32 %v87_v32, %v83_v30  ;;  %v95_v35 = vadd.f32 %v94_v33, %v90_v31 }
  0xb4   :  { %v100_v36 = vld [vmem:[#allocation2] sm:$0xf]  ;;  %v106_v38 = vld [vmem:[#allocation4] sm:$0xf] }
  0xb5   :  { %89 = vst.msk [vmem:[#allocation6] sm:$0xf] %vm40_vm0, %v88_v34  ;;  %96 = vst.msk [vmem:[#allocation7] sm:$0xf] %vm40_vm0, %v95_v35  ;;  %v101_v37 = vmax.f32 %v100_v36, 1e-24 }
  0xb6   :  { %v107_v42 = vmax.f32 %v106_v38, 1e-24 }
  0xb7   :  { %162 = vrsqrt.f32 %v101_v37 }
  0xb8   :  { %v103_v39 = vld [vmem:[#allocation3] sm:$0xf]  ;;  %v109_v40 = vld [vmem:[#allocation5] sm:$0xf] }
  0xb9   :  { %v104_v41 = vmax.f32 %v103_v39, 1e-24  ;;  %v110_v43 = vmax.f32 %v109_v40, 1e-24 }
  0xbb   :  { %164 = vrsqrt.f32 %v104_v41 }
  0xbc   :  { %166 = vrsqrt.f32 %v110_v43  ;;  %v112_v45 = vld [vmem:[#allocation6] sm:$0xf]  ;;  %v123_v46 = vld [vmem:[#allocation7] sm:$0xf] }
  0xbd   :  { %168 = vrsqrt.f32 %v107_v42 }
  0xc4   :  { %v163_v44 = vpop.eup %162 }
  0xc5   :  { %v113_v48 = vmul.f32 %v163_v44, %v112_v45 }
  0xc8   :  { %v165_v47 = vpop.eup %164 }
  0xc9   :  { %v167_v49 = vpop.eup %166  ;;  %v124_v50 = vmul.f32 %v165_v47, %v123_v46 }
  0xca   :  { %v169_v51 = vpop.eup %168  ;;  %v114_v52 = vmul.f32 %v167_v49, %v113_v48 }
  0xcb   :  { %v125_v53 = vmul.f32 %v169_v51, %v124_v50 }
  0xcc   :  { %v115_v54 = vsel %vm40_vm0, %v114_v52, 0.0 }
  0xcd   :  { %v116_v55 = vrot.slane %v115_v54, 4  ;;  %v126_v56 = vsel %vm40_vm0, %v125_v53, 0.0 }
  0xce   :  { %v127_v57 = vrot.slane %v126_v56, 4 }
  0xcf   :  { %v117_v58 = vadd.f32 %v116_v55, %v115_v54 }
  0xd0   :  { %v128_v59 = vadd.f32 %v127_v57, %v126_v56 }
  0xd1   :  { %v118_v60 = vrot.slane %v117_v58, 2 }
  0xd2   :  { %v129_v61 = vrot.slane %v128_v59, 2 }
  0xd3   :  { %v119_v62 = vadd.f32 %v118_v60, %v117_v58 }
  0xd4   :  { %v130_v63 = vadd.f32 %v129_v61, %v128_v59 }
  0xd5   :  { %v120_v0 = vrot.slane %v119_v62, 1 }
  0xd6   :  { %v131_v1 = vrot.slane %v130_v63, 1 }
  0xd7   :  { %v121_v2 = vadd.f32 %v120_v0, %v119_v62 }
  0xd8   :  { %v132_v3 = vadd.f32 %v131_v1, %v130_v63 }
  0xda   :  { %v133_v4 = vadd.f32 %v132_v3, %v121_v2 }
  0xdc   :  { %136 = vperm.xlu0 %161, %v133_v4  }
 0x157   :  { %v137_v5 = vpop.permute.xlu0 %136 }
 0x158   :  { %139 = vst [vmem:[#allocation13] sm:$0xff] %v137_v5 }
 0x159   :  { %221 = shalt.err (!%p218_p0)
}
 0x15a   :  { %149 = dma.vmem_to_hbm [thread:$0]  %s147_s1, 128, %s287_s2, [#allocation10]  }
 0x15b   :  { %234 = dma.done.wait [#allocation10], 128  }
 0x15c   :  { %235 = vsyncadd [#allocation10], 4294967168 }
 0x15d   :  { %153 = vsyncpa [#allocation9], 1 }
 0x15e   :  { %154 = vsyncpa [#allocation12], 1 }
 0x15f   :  { %155 = vsyncpa [#allocation10], 1 }

</bundles_post_ra>
